<compile_context>
chip_gen: v7x
topology: tpu7x:2x2x1
jax: 0.10.0
libtpu: 0.0.40
codegen_flags: <defaults>
</compile_context>

<pallas_src>
import functools

import jax
import jax.numpy as jnp
from jax.experimental import pallas as pl
from jax.experimental.pallas import tpu as pltpu


def _round_up(x, m):
    return ((x + m - 1) // m) * m


def _pick_time_tile(T, max_rows, min_rows):
    """Pick a time tile TT (multiple of 8, min_rows <= TT <= max_rows) and the
    (possibly padded) time extent T_pad such that TT divides T_pad."""
    min_rows = max(8, _round_up(min_rows, 8))
    max_rows = max(min_rows, (max_rows // 8) * 8)
    if T % 8 == 0 and min_rows <= T <= max_rows:
        return T, T
    tt = max_rows
    while tt >= min_rows:
        if T % tt == 0:
            return tt, T
        tt -= 8
    # No clean divisor: pad the time axis up to a multiple of the tile.
    tt = min(max_rows, max(min_rows, _round_up(T, 8)))
    return tt, _round_up(T, tt)


def _dilated_causal_conv_kernel(
        halo_ref, x_ref, w_ref, b_ref,   # inputs
        y_ref,                           # output
        stack_ref,                       # VMEM scratch (bf16 stacked taps)
        *, kernel_size, dilation, h_pad, t_tile, c_in):
    # Write each dilated tap straight into the stacked operand (single staging
    # level; all slice starts are static):
    #   stack[r, k*C:(k+1)*C] = x[tile_start + r - (K-1-k)*dilation, :]
    for k in range(kernel_size):
        shift = (kernel_size - 1 - k) * dilation
        cols = slice(k * c_in, (k + 1) * c_in)
        if shift == 0:
            stack_ref[:, cols] = x_ref[0]
        else:
            stack_ref[0:shift, cols] = halo_ref[0, 0, h_pad - shift:h_pad, :]
            if shift < t_tile:
                stack_ref[shift:t_tile, cols] = x_ref[0, 0:t_tile - shift, :]

    # One fused MXU matmul: bf16 operands, f32 accumulation; bias epilogue.
    y = jnp.dot(stack_ref[...], w_ref[...], preferred_element_type=jnp.float32)
    y_ref[0] = (y + b_ref[...]).astype(y_ref.dtype)


def dilated_causal_conv1d_ntc(x_ntc, w_torch, bias, *, kernel_size, dilation=2,
                              max_tile_t=2048, out_dtype=jnp.float32):
    """Channels-last dilated causal conv.

    x_ntc:   (B, T, C_in)   activations (streamed to the kernel as bf16)
    w_torch: (C_out, C_in, K)  torch Conv1d weight layout
    bias:    (C_out,)
    Returns  (B, T, C_out) in `out_dtype`, causal:
             y[:, t] = sum_k W[..., k] @ x[:, t - (K-1-k)*dilation] + b
    """
    B, T, C_in = x_ntc.shape
    C_out, C_in_w, K = w_torch.shape
    assert C_in_w == C_in and K == kernel_size
    pad = (K - 1) * dilation
    assert pad >= 1, "causal conv needs (kernel_size-1)*dilation >= 1"

    Hpad = _round_up(pad, 8)                     # sublane-aligned causal halo

    # Per-time-row VMEM bytes: double-buffered bf16 x + bf16 stack + double-
    # buffered y.  Cap the per-tile footprint at ~12 MiB so we stay well under
    # the 32 MiB scoped-VMEM limit on every generation (v7x: 64 MiB physical).
    out_bytes = jnp.dtype(out_dtype).itemsize
    row_bytes = 2 * 2 * C_in + 2 * K * C_in + 2 * out_bytes * C_out
    budget_rows = max(8, (12 * 1024 * 1024) // max(row_bytes, 1))
    TT, T_pad = _pick_time_tile(T, min(max_tile_t, budget_rows), Hpad)
    nT = T_pad // TT

    # bf16 activation stream (the MXU consumes bf16 anyway; halves HBM bytes).
    x = x_ntc.astype(jnp.bfloat16)
    if T_pad != T:
        x = jnp.pad(x, ((0, 0), (0, T_pad - T), (0, 0)))

    # Causal halo per tile: last Hpad rows of the previous tile, zeros for the
    # first tile.  The reshape is free; the slice/concat touches only ~Hpad/TT
    # of one x pass (vs. the old full pad + gather passes).
    x_r = x.reshape(B, nT, TT, C_in)
    zero_halo = jnp.zeros((B, 1, Hpad, C_in), x.dtype)
    if nT > 1:
        halo = jnp.concatenate([zero_halo, x_r[:, :nT - 1, TT - Hpad:, :]],
                               axis=1)                     # (B, nT, Hpad, C_in)
    else:
        halo = zero_halo

    # torch (C_out, C_in, K) -> fused (K*C_in, C_out) bf16 operand; row block k
    # matches stack column block k (oldest tap first).
    w_flat = jnp.transpose(w_torch, (2, 1, 0)).reshape(K * C_in, C_out)
    w_flat = w_flat.astype(jnp.bfloat16)
    b_row = bias.reshape(1, C_out).astype(jnp.float32)

    kernel = functools.partial(
        _dilated_causal_conv_kernel,
        kernel_size=K, dilation=dilation, h_pad=Hpad, t_tile=TT, c_in=C_in)

    y = pl.pallas_call(
        kernel,
        out_shape=jax.ShapeDtypeStruct((B, T_pad, C_out), out_dtype),
        grid=(B, nT),
        in_specs=[
            pl.BlockSpec((1, 1, Hpad, C_in), lambda b, t: (b, t, 0, 0)),  # halo
            pl.BlockSpec((1, TT, C_in), lambda b, t: (b, t, 0)),          # x tile
            # Weight/bias index_maps are grid-invariant -> Pallas keeps a
            # single resident copy (no per-step re-DMA).
            pl.BlockSpec((K * C_in, C_out), lambda b, t: (0, 0)),         # weight
            pl.BlockSpec((1, C_out), lambda b, t: (0, 0)),                # bias
        ],
        out_specs=pl.BlockSpec((1, TT, C_out), lambda b, t: (b, t, 0)),
        scratch_shapes=[
            pltpu.VMEM((TT, K * C_in), jnp.bfloat16),      # stacked dilated taps
        ],
        compiler_params=pltpu.CompilerParams(
            dimension_semantics=("parallel", "parallel"),
            vmem_limit_bytes=32 * 1024 * 1024),
    )(halo, x, w_flat, b_row)

    if T_pad != T:
        y = y[:, :T, :]
    return y


def dilated_causal_conv1d(x_ncw, w_torch, bias, *, kernel_size, dilation=2,
                          max_tile_t=2048):
    """Drop-in NCW interface matching torch DilatedCausalConv1d.forward:
    x_ncw: (B, C_in, T) -> (B, C_out, T), causal (== conv(x)[:, :, :-pad]).

    TODO(synk): a full WaveNet stack should stay channels-last end-to-end and
    call dilated_causal_conv1d_ntc directly so these boundary transposes
    (each a full HBM pass) disappear; here the transpose at least emits bf16
    so the copy is half-width.
    """
    x_ntc = jnp.transpose(x_ncw, (0, 2, 1)).astype(jnp.bfloat16)
    y_ntc = dilated_causal_conv1d_ntc(
        x_ntc, w_torch, bias, kernel_size=kernel_size, dilation=dilation,
        max_tile_t=max_tile_t)
    return jnp.transpose(y_ntc, (0, 2, 1))


def _reference(x_ncw, w_torch, bias, *, kernel_size, dilation):
    """Pure-JAX reference mirroring the PyTorch module (bf16 operands, f32 acc)."""
    pad = (kernel_size - 1) * dilation
    y = jax.lax.conv_general_dilated(
        x_ncw.astype(jnp.bfloat16), w_torch.astype(jnp.bfloat16),
        window_strides=(1,), padding=[(pad, pad)], rhs_dilation=(dilation,),
        dimension_numbers=("NCH", "OIH", "NCH"),
        preferred_element_type=jnp.float32)[:, :, :-pad]
    return y + bias.reshape(1, -1, 1).astype(jnp.float32)


def _run_case(key, B, C_in, C_out, T, K, dilation, max_tile_t):
    k0, k1, k2 = jax.random.split(key, 3)
    x = jax.random.normal(k0, (B, C_in, T), jnp.float32)
    w = 0.1 * jax.random.normal(k1, (C_out, C_in, K), jnp.float32)
    b = 0.1 * jax.random.normal(k2, (C_out,), jnp.float32)

    y = dilated_causal_conv1d(x, w, b, kernel_size=K, dilation=dilation,
                              max_tile_t=max_tile_t)
    jax.block_until_ready(y)

    y_ref = _reference(x, w, b, kernel_size=K, dilation=dilation)
    assert y.shape == (B, C_out, T)
    assert jnp.allclose(y, y_ref, atol=2e-3, rtol=2e-3), (
        float(jnp.max(jnp.abs(y - y_ref))))


if __name__ == "__main__":
    key = jax.random.PRNGKey(0)
    k_a, k_b, k_c = jax.random.split(key, 3)

    # Case 1: WaveNet-like block (K=2, dilation=2).  max_tile_t is deliberately
    # small here ONLY to exercise the cross-tile causal-halo path; production
    # use keeps the 2048-row default.
    _run_case(k_a, B=2, C_in=64, C_out=128, T=512, K=2, dilation=2,
              max_tile_t=128)

    # Case 2: wider receptive field (K=3, dilation=4), default (large) tile.
    _run_case(k_b, B=2, C_in=32, C_out=128, T=256, K=3, dilation=4,
              max_tile_t=2048)

    # Case 3: ragged time length (T not a multiple of 8) -> pad-and-slice path.
    _run_case(k_c, B=1, C_in=32, C_out=128, T=250, K=2, dilation=2,
              max_tile_t=64)

    print("KERNEL_OK")
</pallas_src>

<mosaic_0001>
module attributes {stable_mosaic.version = 11 : i64} {
  func.func @_dilated_causal_conv_kernel(%arg0: i32, %arg1: i32, %arg2: memref<1x1x8x64xbf16, #tpu.memory_space<vmem>>, %arg3: memref<1x128x64xbf16, #tpu.memory_space<vmem>>, %arg4: memref<128x128xbf16, #tpu.memory_space<vmem>>, %arg5: memref<1x128xf32, #tpu.memory_space<vmem>>, %arg6: memref<1x128x128xf32, #tpu.memory_space<vmem>>, %arg7: memref<128x128xbf16, #tpu.memory_space<vmem>>) attributes {dimension_semantics = [#tpu.dimension_semantics<parallel>, #tpu.dimension_semantics<parallel>], iteration_bounds = array<i64: 2, 4>, scalar_prefetch = 0 : i64, scratch_operands = 1 : i64, tpu.core_type = #tpu.core_type<tc>, window_params = [{transform_indices = @transform_0, window_bounds = array<i64: 1, 1, 8, 64>}, {transform_indices = @transform_1, window_bounds = array<i64: 1, 128, 64>}, {pipeline_mode = #tpu.pipeline_mode<synchronous>, transform_indices = @transform_2, window_bounds = array<i64: 128, 128>}, {pipeline_mode = #tpu.pipeline_mode<synchronous>, transform_indices = @transform_3, window_bounds = array<i64: 1, 128>}, {transform_indices = @transform_4, window_bounds = array<i64: 1, 128, 128>}]} {
    %c0 = arith.constant 0 : index
    %c0_0 = arith.constant 0 : index
    %c6 = arith.constant 6 : index
    %c0_1 = arith.constant 0 : index
    %0 = vector.load %arg2[%c0, %c0_0, %c6, %c0_1] : memref<1x1x8x64xbf16, #tpu.memory_space<vmem>>, vector<1x1x2x64xbf16>
    %1 = vector.shape_cast %0 : vector<1x1x2x64xbf16> to vector<2x64xbf16>
    %c0_2 = arith.constant 0 : index
    %c0_3 = arith.constant 0 : index
    %2 = vector.load %arg7[%c0_2, %c0_3] : memref<128x128xbf16, #tpu.memory_space<vmem>>, vector<2x64xbf16>
    tpu.vector_store %arg7[%c0_2, %c0_3], %1 {strides = array<i32>} : memref<128x128xbf16, #tpu.memory_space<vmem>>, vector<2x64xbf16>,
    %c0_4 = arith.constant 0 : index
    %c0_5 = arith.constant 0 : index
    %c0_6 = arith.constant 0 : index
    %3 = vector.load %arg3[%c0_4, %c0_5, %c0_6] : memref<1x128x64xbf16, #tpu.memory_space<vmem>>, vector<1x126x64xbf16>
    %4 = vector.shape_cast %3 : vector<1x126x64xbf16> to vector<126x64xbf16>
    %c2 = arith.constant 2 : index
    %c0_7 = arith.constant 0 : index
    %5 = vector.load %arg7[%c2, %c0_7] : memref<128x128xbf16, #tpu.memory_space<vmem>>, vector<126x64xbf16>
    tpu.vector_store %arg7[%c2, %c0_7], %4 {strides = array<i32>} : memref<128x128xbf16, #tpu.memory_space<vmem>>, vector<126x64xbf16>,
    %c0_8 = arith.constant 0 : index
    %c0_9 = arith.constant 0 : index
    %c0_10 = arith.constant 0 : index
    %6 = vector.load %arg3[%c0_8, %c0_9, %c0_10] : memref<1x128x64xbf16, #tpu.memory_space<vmem>>, vector<1x128x64xbf16>
    %7 = vector.shape_cast %6 : vector<1x128x64xbf16> to vector<128x64xbf16>
    %c0_11 = arith.constant 0 : index
    %c64 = arith.constant 64 : index
    %8 = vector.load %arg7[%c0_11, %c64] : memref<128x128xbf16, #tpu.memory_space<vmem>>, vector<128x64xbf16>
    tpu.vector_store %arg7[%c0_11, %c64], %7 {strides = array<i32>} : memref<128x128xbf16, #tpu.memory_space<vmem>>, vector<128x64xbf16>,
    %c0_12 = arith.constant 0 : index
    %c0_13 = arith.constant 0 : index
    %9 = vector.load %arg7[%c0_12, %c0_13] : memref<128x128xbf16, #tpu.memory_space<vmem>>, vector<128x128xbf16>
    %c0_14 = arith.constant 0 : index
    %c0_15 = arith.constant 0 : index
    %10 = vector.load %arg4[%c0_14, %c0_15] : memref<128x128xbf16, #tpu.memory_space<vmem>>, vector<128x128xbf16>
    %cst = arith.constant dense<0.000000e+00> : vector<128x128xf32>
    %11 = tpu.matmul %9, %10, %cst {dimension_numbers = #tpu.dot_dimension_numbers<[1], [0], [0], [1], [0, 0, 1, 1], [], []>} : vector<128x128xbf16>, vector<128x128xbf16>, vector<128x128xf32> -> vector<128x128xf32>
    %c0_16 = arith.constant 0 : index
    %c0_17 = arith.constant 0 : index
    %12 = vector.load %arg5[%c0_16, %c0_17] : memref<1x128xf32, #tpu.memory_space<vmem>>, vector<1x128xf32>
    %13 = vector.broadcast %12 : vector<1x128xf32> to vector<128x128xf32>
    %14 = arith.addf %11, %13 : vector<128x128xf32>
    %c0_18 = arith.constant 0 : index
    %c0_19 = arith.constant 0 : index
    %c0_20 = arith.constant 0 : index
    %15 = vector.load %arg6[%c0_18, %c0_19, %c0_20] : memref<1x128x128xf32, #tpu.memory_space<vmem>>, vector<1x128x128xf32>
    %16 = vector.shape_cast %15 : vector<1x128x128xf32> to vector<128x128xf32>
    %17 = vector.shape_cast %14 : vector<128x128xf32> to vector<1x128x128xf32>
    tpu.vector_store %arg6[%c0_18, %c0_19, %c0_20], %17 {strides = array<i32>} : memref<1x128x128xf32, #tpu.memory_space<vmem>>, vector<1x128x128xf32>,
    return
  }
  func.func @transform_0(%arg0: i32, %arg1: i32) -> (i32, i32, i32, i32) {
    %c0_i32 = arith.constant 0 : i32
    %c0_i32_0 = arith.constant 0 : i32
    %c0_i32_1 = arith.constant 0 : i32
    return %arg0, %arg1, %c0_i32, %c0_i32_0 : i32, i32, i32, i32
  }
  func.func @transform_1(%arg0: i32, %arg1: i32) -> (i32, i32, i32) {
    %c0_i32 = arith.constant 0 : i32
    %c0_i32_0 = arith.constant 0 : i32
    return %arg0, %arg1, %c0_i32 : i32, i32, i32
  }
  func.func @transform_2(%arg0: i32, %arg1: i32) -> (i32, i32) {
    %c0_i32 = arith.constant 0 : i32
    %c0_i32_0 = arith.constant 0 : i32
    %c0_i32_1 = arith.constant 0 : i32
    return %c0_i32, %c0_i32_0 : i32, i32
  }
  func.func @transform_3(%arg0: i32, %arg1: i32) -> (i32, i32) {
    %c0_i32 = arith.constant 0 : i32
    %c0_i32_0 = arith.constant 0 : i32
    %c0_i32_1 = arith.constant 0 : i32
    return %c0_i32, %c0_i32_0 : i32, i32
  }
  func.func @transform_4(%arg0: i32, %arg1: i32) -> (i32, i32, i32) {
    %c0_i32 = arith.constant 0 : i32
    %c0_i32_0 = arith.constant 0 : i32
    return %arg0, %arg1, %c0_i32 : i32, i32, i32
  }
}

</mosaic_0001>

<bundles_post_ra>
// kernel: tpu_custom_call.1
= control target key start
LH: loop header
LB: loop body
LE: loop exit
PB: predicated region body
PF: predicated region fallthrough
CT: control target
= control target key end

     0   :  { %9 = vsyncpa [#allocation4], 0  ;;  %s1333_s0 = inlined_call_operand.vmem [shape: bf16[2,4,8,64], index: 0, kind: input, shape index: {}]   ;;  %s1334_s1 = inlined_call_operand.vmem [shape: bf16[2,512,64], index: 1, kind: input, shape index: {}]   ;;  %s1335_s2 = inlined_call_operand.vmem [shape: bf16[128,128], index: 2, kind: input, shape index: {}]   ;;  %s1336_s3 = inlined_call_operand.vmem [shape: f32[1,128], index: 3, kind: input, shape index: {}]   ;;  %s1337_s4 = inlined_call_operand.hbm [shape: f32[2,512,128], index: 4, kind: output, shape index: {}]  }
   0x1   :  { %11 = vsyncpa [#allocation4 + $0x1], 0  ;;  %s1085_s15 = smov 0   ;;  %s1087_s16 = smov 0  }
   0x2   :  { %s1089_s17 = smov 0   ;;  %s1091_s18 = smov 0  }
   0x3   :  { %s1093_s19 = smov 0   ;;  %s1095_s20 = smov 0  }
   0x4   :  { %s1097_s21 = smov 0   ;;  %s1099_s22 = smov 0  }
   0x5 LB: > { %s754_s23 = sadd.s32 4294967295, %s1054_s22   ;;  %s755_s24 = sadd.s32 4294967294, %s1054_s22   ;;  %s1054_s22 = sphi %s1099_s22, %s17_s22   ;;  %s1050_s21 = sphi %s1097_s21, %s1346_s21   ;;  %s1046_s20 = sphi %s1095_s20, %s1345_s20   ;;  %s1042_s19 = sphi %s1093_s19, %s1344_s19   ;;  %s1038_s18 = sphi %s1091_s18, %s1343_s18   ;;  %s1034_s17 = sphi %s1089_s17, %s1342_s17   ;;  %s1030_s16 = sphi %s1087_s16, %s1341_s16   ;;  %s1026_s15 = sphi %s1085_s15, %s1340_s15  }
   0x6   : > { %s26_s25 = sadd.s32 1, %s1046_s20  ;;  %s29_s26 = sadd.s32 1, %s1050_s21 }
   0x7   : > { %p27_p0 = scmp.ge.s32.totalorder %s26_s25, 4  ;;  %p146_p1 = scmp.ne.s32.totalorder %s1034_s17, %s1030_s16 }
   0x8   : > { %p147_p2 = scmp.eq.s32.totalorder %s754_s23, 7  ;;  %p152_p5 = scmp.ne.s32.totalorder %s1030_s16, %s1026_s15 }
   0x9   : > { %s1348_s25 = smov (%p27_p0, %s26_s25), 0  ;;  %s1350_s26 = smov (!%p27_p0, %s29_s26), %s1050_s21 }
   0xa   : > { %s132_s27 = ssub.s32 %s1046_s20, %s1348_s25  ;;  %p1136_p3 = por %p147_p2, %p146_p1 }
   0xb   : > { %p31_p4 = scmp.ge.s32.totalorder %s1350_s26, 2  ;;  %p153_p6 = scmp.eq.s32.totalorder %s755_s24, 7 }
   0xc   : > { %p758_p7 = scmp.ge.s32.totalorder %s1054_s22, 1  ;;  %p201_p9 = scmp.lt.s32.totalorder %s1054_s22, 9 }
   0xd   : > { %s1352_s26 = smov (%p31_p4, %s1350_s26), 0  ;;  %p1145_p8 = por %p153_p6, %p152_p5 }
   0xe   : > { %s131_s30 = ssub.s32 %s1050_s21, %s1352_s26  ;;  %s136_s5 = sadd.s32 1, %s1034_s17 }
   0xf   : > { %s133_s6 = sor.u32 %s132_s27, %s131_s30  ;;  %p202_p10 = pnand %p758_p7, %p201_p9 }
  0x10   : > { %p134_p11 = scmp.eq.s32.totalorder %s133_s6, 0  ;;  %p239_p12 = scmp.lt.s32.totalorder (!%p202_p10), %s1042_s19, 1  ;;  %v943_v0 = vld [vmem:[%s1335_s2] sm:$0xff] (!%p202_p10)   ;;  %v944_v1 = vld [vmem:[%s1335_s2 + $0x8] sm:$0xff] (!%p202_p10)   ;;  %v945_v2 = vld [vmem:[%s1335_s2 + $0x10] sm:$0xff] (!%p202_p10)   ;;  %vm265_vm0 = vcmask (!%p202_p10), 516096  }
  0x11   : > { %205 = sbr.rel (%p202_p10) target bundleno = 399 (0x18f), region = 36  ;;  %s1158_s8 = sshll.u32 (!%p202_p10), %s1038_s18, 4  ;;  %813 = vmatprep.subr.bf16.mxu0 (!%p202_p10), %v943_v0  ;;  %845 = vmatprep.subr.bf16.mxu1 (!%p202_p10), %v943_v0  ;;  %v946_v3 = vld [vmem:[%s1335_s2 + $0x18] sm:$0xff] (!%p202_p10)   ;;  %v947_v8 = vld [vmem:[%s1335_s2 + $0x20] sm:$0xff] (!%p202_p10)   ;;  %vm347_vm1 = vcmask (!%p202_p10), 523265   ;;  %vm323_vm2 = vcmask (!%p202_p10), 1040384  }
  0x12   : > { %s1154_s7 = scalar_select %p134_p11, %s1034_s17, %s136_s5  }
  0x13   : > { %p250_p13 = scmp.lt.s32.totalorder (!%p202_p10), %s1158_s8, 63  ;;  %814 = vmatpush3.bf16.msra.mxu0 (!%p202_p10), %v943_v0  ;;  %853 = vmatpush3.bf16.msra.mxu1 (!%p202_p10), %v943_v0  ;;  %p241_p0 = scmp.lt.s32.totalorder (!%p202_p10), %s1038_s18, 3  ;;  %v948_v11 = vld [vmem:[%s1335_s2 + $0x28] sm:$0xff] (!%p202_p10)   ;;  %vm349_vm3 = vcmask (!%p202_p10), 523264   ;;  %v952_v20 = vld [vmem:[%s1335_s2 + $0x30] sm:$0xff] (!%p202_p10)   ;;  %v956_v32 = vld [vmem:[%s1335_s2 + $0x38] sm:$0xff] (!%p202_p10)  }
  0x14   : > { %815 = vmatprep.subr.bf16.mxu0 (!%p202_p10), %v944_v1  ;;  %846 = vmatprep.subr.bf16.mxu1 (!%p202_p10), %v944_v1  ;;  %vm437_vm4 = vcmask (!%p202_p10), 1048064   ;;  %v782_v57 = vld [vmem:[%s1336_s3] ss:$0 sm:$0xff] (!%p202_p10) }
  0x17   : > { %816 = vmatpush3.bf16.msra.mxu0 (!%p202_p10), %v944_v1  ;;  %854 = vmatpush3.bf16.msra.mxu1 (!%p202_p10), %v944_v1 }
  0x18   : > { %s240_s13 = scalar_select %p239_p12, %s1042_s19, 1  ;;  %817 = vmatprep.subr.bf16.mxu0 %v945_v2  ;;  %847 = vmatprep.subr.bf16.mxu1 %v945_v2 }
  0x19   : > { %s251_s14 = scalar_select %p250_p13, %s1158_s8, 63 }
  0x1a   : > { %s763_s23 = sshll.u32 %s240_s13, 6  ;;  %s760_s24 = sshll.u32 %s240_s13, 2 }
  0x1b   : > { %s253_s30 = sadd.s32 %s763_s23, %s251_s14  ;;  %s1354_s18 = smov (!%p241_p0, %s1038_s18), 3  ;;  %818 = vmatpush3.bf16.msra.mxu0 %v945_v2  ;;  %855 = vmatpush3.bf16.msra.mxu1 %v945_v2 }
  0x1c   : > { %s764_s5 = sshll.u32 %s253_s30, 2  ;;  %s1056_s14 = smov 64   ;;  %819 = vmatprep.subr.bf16.mxu0 %v946_v3  ;;  %848 = vmatprep.subr.bf16.mxu1 %v946_v3 }
  0x1d   : > { %s1176_s10 = scalar_lea.vmem %s1334_s1, %s764_s5  ;;  %s244_s23 = sadd.s32 %s760_s24, %s1354_s18 }
  0x1e   : > { %v935_v4 = vld [vmem:[%s1176_s10] sm:$0xff]   ;;  %v936_v5 = vld [vmem:[%s1176_s10 + $0x8] sm:$0xff]   ;;  %s761_s27 = sshll.u32 %s244_s23, 2  ;;  %v939_v9 = vld [vmem:[%s1176_s10 + $0x10] sm:$0xff]   ;;  %s793_s18 = sshll.u32 %s1042_s19, 6 }
  0x1f   : > { %413 = vrot.lane.b32.xlu0 %v935_v4, %s1056_s14  ;;  %v937_v6 = vld [vmem:[%s1176_s10 + $0x20] sm:$0xff]   ;;  %415 = vrot.lane.b32.xlu1 %v936_v5, %s1056_s14  ;;  %v938_v7 = vld [vmem:[%s1176_s10 + $0x28] sm:$0xff]   ;;  %s246_s6 = scalar_lea.vmem %s1333_s0, %s761_s27  ;;  %s1057_s27 = smov [#allocation3]  }
  0x20   : > { %v940_v10 = vld [vmem:[%s1176_s10 + $0x30] sm:$0xff]   ;;  %v941_v12 = vld [vmem:[%s1176_s10 + $0x18] sm:$0xff]   ;;  %820 = vmatpush3.bf16.msra.mxu0 %v946_v3  ;;  %856 = vmatpush3.bf16.msra.mxu1 %v946_v3  ;;  %v949_v13 = vld [vmem:[%s246_s6] ss:$0 sps:$4 sm:$0x88]   ;;  %s651_s6 = sadd.s32 %s793_s18, %s1158_s8 }
  0x21   : > { %v950_v14 = vld [vmem:[%s1176_s10] sm:$0xff]   ;;  %v942_v15 = vld [vmem:[%s1176_s10 + $0x38] sm:$0xff]   ;;  %821 = vmatprep.subr.bf16.mxu0 %v947_v8  ;;  %849 = vmatprep.subr.bf16.mxu1 %v947_v8  ;;  %v263_v16 = vrot.slane %v949_v13, 3  ;;  %v951_v18 = vld [vmem:[%s1176_s10 + $0x8] sm:$0xff]   ;;  %s794_s9 = sshll.u32 %s651_s6, 7 }
  0x22   : > { %v324_v17 = vrot.slane %v950_v14, 7  ;;  %v953_v19 = vld [vmem:[%s1176_s10 + $0x18] sm:$0xff]   ;;  %v325_v21 = vrot.slane %v951_v18, 7  ;;  %v954_v22 = vld [vmem:[%s1176_s10 + $0x20] sm:$0xff]   ;;  %v955_v24 = vld [vmem:[%s1176_s10 + $0x28] sm:$0xff]   ;;  %s1270_s12 = scalar_lea.hbm %s1337_s4, %s794_s9 }
  0x23   : > { %421 = vrot.lane.b32.xlu0 %v937_v6, %s1056_s14  ;;  %423 = vrot.lane.b32.xlu1 %v938_v7, %s1056_s14  ;;  %266 = vst.msk [vmem:[#allocation2] sm:$0x1] %vm265_vm0, %v263_v16  ;;  %v329_v23 = vrot.slane %v953_v19, 7  ;;  %v331_v26 = vrot.slane %v954_v22, 7  ;;  %v333_v27 = vrot.slane %v955_v24, 7  ;;  %v957_v28 = vld [vmem:[%s1176_s10 + $0x10] sm:$0xff]  }
  0x24   : > { %822 = vmatpush3.bf16.msra.mxu0 %v947_v8  ;;  %857 = vmatpush3.bf16.msra.mxu1 %v947_v8  ;;  %348 = vst.msk [vmem:[#allocation2] sm:$0xfe] %vm347_vm1, %v324_v17  ;;  %v326_v25 = vsel %vm323_vm2, %v324_v17, %v325_v21  ;;  %v958_v30 = vld [vmem:[%s1176_s10 + $0x30] sm:$0xff]   ;;  %v327_v33 = vrot.slane %v957_v28, 7  ;;  %v959_v35 = vld [vmem:[%s1176_s10 + $0x38] sm:$0x7f]  }
  0x25   : > { %823 = vmatprep.subr.bf16.mxu0 %v948_v11  ;;  %850 = vmatprep.subr.bf16.mxu1 %v948_v11  ;;  %350 = vst.msk [vmem:[#allocation2 + $0x8] sm:$0xff] %vm349_vm3, %v326_v25  ;;  %v332_v29 = vsel %vm323_vm2, %v329_v23, %v331_v26  ;;  %v334_v31 = vsel %vm323_vm2, %v331_v26, %v333_v27  ;;  %v335_v34 = vrot.slane %v958_v30, 7  ;;  %v337_v39 = vrot.slane %v959_v35, 7  ;;  %s236_s10 = sand.u32 1, %s1030_s16  }
  0x26   : > { %353 = vst.msk [vmem:[#allocation2 + $0x20] sm:$0xff] %vm349_vm3, %v332_v29  ;;  %354 = vst.msk [vmem:[#allocation2 + $0x28] sm:$0xff] %vm349_vm3, %v334_v31  ;;  %v328_v36 = vsel %vm323_vm2, %v325_v21, %v327_v33  ;;  %v330_v37 = vsel %vm323_vm2, %v327_v33, %v329_v23  ;;  %s1281_s24 = scalar_lea.sflag [#allocation4], %s236_s10 }
  0x27   : > { %417 = vrot.lane.b32.xlu0 %v939_v9, %s1056_s14  ;;  %425 = vrot.lane.b32.xlu1 %v940_v10, %s1056_s14  ;;  %351 = vst.msk [vmem:[#allocation2 + $0x10] sm:$0xff] %vm349_vm3, %v328_v36  ;;  %v336_v38 = vsel %vm323_vm2, %v333_v27, %v335_v34  ;;  %352 = vst.msk [vmem:[#allocation2 + $0x18] sm:$0xff] %vm349_vm3, %v330_v37  ;;  %v338_v40 = vsel %vm323_vm2, %v335_v34, %v337_v39 }
  0x28   : > { %824 = vmatpush3.bf16.msra.mxu0 %v948_v11  ;;  %858 = vmatpush3.bf16.msra.mxu1 %v948_v11  ;;  %355 = vst.msk [vmem:[#allocation2 + $0x30] sm:$0xff] %vm349_vm3, %v336_v38  ;;  %356 = vst.msk [vmem:[#allocation2 + $0x38] sm:$0xff] %vm349_vm3, %v338_v40 }
  0x29   : > { %825 = vmatprep.subr.bf16.mxu0 %v952_v20  ;;  %851 = vmatprep.subr.bf16.mxu1 %v952_v20 }
  0x2b   : > { %419 = vrot.lane.b32.xlu0 %v941_v12, %s1056_s14  ;;  %427 = vrot.lane.b32.xlu1 %v942_v15, %s1056_s14  ;;  %s759_s14 = sshll.u32 %s236_s10, 7 }
  0x2c   : > { %826 = vmatpush3.bf16.msra.mxu0 %v952_v20  ;;  %859 = vmatpush3.bf16.msra.mxu1 %v952_v20  ;;  %s1251_s5 = scalar_lea.vmem [#allocation3], %s759_s14  ;;  %s964_s14 = sshll.u32 %s1057_s27, 4  ;;  %s965_s14 = int_to_ptr.vmem [resolvable:$false] %s964_s14 }
  0x2d   : > { %827 = vmatprep.subr.bf16.mxu0 %v956_v32  ;;  %852 = vmatprep.subr.bf16.mxu1 %v956_v32  ;;  %s654_s11 = sshll.u32 %s1251_s5, 4  ;;  %s966_s13 = scalar_lea.vmem %s965_s14, 4096  ;;  %s1272_s11 = int_to_ptr.vmem [resolvable:$true] %s654_s11 }
  0x2e   : > { %s960_s23 = scalar_lea.vmem %s1272_s11, 2048  ;;  %p967_p5 = scmp.lt.s32.totalorder %s1272_s11, %s965_s14 }
  0x2f   : > { %p961_p1 = scmp.ne.s32.totalorder %s1272_s11, %s960_s23  ;;  %p968_p6 = scmp.lt.s32.totalorder %s966_s13, %s960_s23 }
  0x30   : > { %828 = vmatpush3.bf16.msra.mxu0 %v956_v32  ;;  %860 = vmatpush3.bf16.msra.mxu1 %v956_v32 }
  0x31   : > { %p962_p2 = pnand %p961_p1, %p1136_p3  ;;  %p969_p7 = por %p968_p6, %p967_p5 }
  0x33   : > { %p963_p4 = pneg %p962_p2 }
  0x35   : > { %p970_p9 = pnand %p969_p7, %p963_p4 }
  0x91   : > { %v414_v41 = vpop.permute.xlu0 %413  ;;  %v416_v42 = vpop.permute.xlu1 %415 }
  0x92   : > { %438 = vst.msk [vmem:[#allocation2] sm:$0xff] %vm437_vm4, %v414_v41  ;;  %439 = vst.msk [vmem:[#allocation2 + $0x8] sm:$0xff] %vm437_vm4, %v416_v42 }
  0x95   : > { %v422_v43 = vpop.permute.xlu0 %421  ;;  %v424_v44 = vpop.permute.xlu1 %423 }
  0x96   : > { %442 = vst.msk [vmem:[#allocation2 + $0x20] sm:$0xff] %vm437_vm4, %v422_v43  ;;  %443 = vst.msk [vmem:[#allocation2 + $0x28] sm:$0xff] %vm437_vm4, %v424_v44 }
  0x99   : > { %v418_v45 = vpop.permute.xlu0 %417  ;;  %v446_v46 = vld [vmem:[#allocation2] sm:$0xff]  ;;  %v426_v47 = vpop.permute.xlu1 %425  ;;  %v447_v48 = vld [vmem:[#allocation2 + $0x8] sm:$0xff] }
  0x9a   : > { %440 = vst.msk [vmem:[#allocation2 + $0x10] sm:$0xff] %vm437_vm4, %v418_v45  ;;  %829 = vmatprep.mubr.bf16.mxu0 %v446_v46  ;;  %444 = vst.msk [vmem:[#allocation2 + $0x30] sm:$0xff] %vm437_vm4, %v426_v47 }
  0x9b   : > { %830 = vmatmul.mubr.bf16.vlgmr.msra.gmra.mrb[0].mxu0 %v447_v48 }
  0x9d   : > { %v420_v49 = vpop.permute.xlu0 %419  ;;  %v450_v50 = vld [vmem:[#allocation2 + $0x20] sm:$0xff]  ;;  %v428_v51 = vpop.permute.xlu1 %427  ;;  %v451_v52 = vld [vmem:[#allocation2 + $0x28] sm:$0xff] }
  0x9e   : > { %441 = vst.msk [vmem:[#allocation2 + $0x18] sm:$0xff] %vm437_vm4, %v420_v49  ;;  %837 = vmatprep.mubr.bf16.mxu1 %v450_v50  ;;  %445 = vst.msk [vmem:[#allocation2 + $0x38] sm:$0xff] %vm437_vm4, %v428_v51 }
  0x9f   : > { %838 = vmatmul.mubr.bf16.vlgmr.msra.gmra.mrb[0].mxu1 %v451_v52 }
  0xa1   : > { %v448_v53 = vld [vmem:[#allocation2 + $0x10] sm:$0xff] }
  0xa2   : > { %833 = vmatprep.mubr.bf16.mxu0 %v448_v53  ;;  %v452_v54 = vld [vmem:[#allocation2 + $0x30] sm:$0xff] }
  0xa3   : > { %841 = vmatprep.mubr.bf16.mxu1 %v452_v54 }
  0xa5   : > { %v449_v55 = vld [vmem:[#allocation2 + $0x18] sm:$0xff] }
  0xa6   : > { %834 = vmatmul.mubr.bf16.gmra.mrb[4].mxu0 %v449_v55  ;;  %v453_v56 = vld [vmem:[#allocation2 + $0x38] sm:$0xff] }
  0xa7   : > { %842 = vmatmul.mubr.bf16.gmra.mrb[4].mxu1 %v453_v56 }
 0x16e   : > { %v831_v58 = vpop.f32.mrb[0].mxu0 }
 0x16f   : > { %v568_v59 = vadd.f32 %v831_v58, %v782_v57  ;;  %v559_v60 = vpop.f32.mrb[1].mxu0 }
 0x170   : > { %v560_v61 = vadd.f32 %v782_v57, %v559_v60  ;;  %v832_v62 = vpop.f32.mrb[2].mxu0 }
 0x171   : > { %624 = vst [vmem:[%s1251_s5 + $0x10] sm:$0xff] %v568_v59  ;;  %v571_v63 = vadd.f32 %v832_v62, %v782_v57  ;;  %v562_v0 = vpop.f32.mrb[3].mxu0 }
 0x172   : > { %622 = vst [vmem:[%s1251_s5] sm:$0xff] %v560_v61  ;;  %v563_v1 = vadd.f32 %v782_v57, %v562_v0  ;;  %v839_v2 = vpop.f32.mrb[0].mxu1 }
 0x173   : > { %625 = vst [vmem:[%s1251_s5 + $0x18] sm:$0xff] %v571_v63  ;;  %v600_v3 = vadd.f32 %v839_v2, %v782_v57  ;;  %v591_v4 = vpop.f32.mrb[1].mxu1 }
 0x174   : > { %623 = vst [vmem:[%s1251_s5 + $0x8] sm:$0xff] %v563_v1  ;;  %v592_v5 = vadd.f32 %v782_v57, %v591_v4  ;;  %v840_v6 = vpop.f32.mrb[2].mxu1 }
 0x175   : > { %632 = vst [vmem:[%s1251_s5 + $0x50] sm:$0xff] %v600_v3  ;;  %v603_v7 = vadd.f32 %v840_v6, %v782_v57  ;;  %v594_v8 = vpop.f32.mrb[3].mxu1 }
 0x176   : > { %630 = vst [vmem:[%s1251_s5 + $0x40] sm:$0xff] %v592_v5  ;;  %v595_v9 = vadd.f32 %v782_v57, %v594_v8 }
 0x177   : > { %633 = vst [vmem:[%s1251_s5 + $0x58] sm:$0xff] %v603_v7 }
 0x178   : > { %631 = vst [vmem:[%s1251_s5 + $0x48] sm:$0xff] %v595_v9 }
 0x179   : > { %v835_v10 = vpop.f32.mrb[4].mxu0 }
 0x17a   : > { %v584_v11 = vadd.f32 %v835_v10, %v782_v57  ;;  %v575_v12 = vpop.f32.mrb[5].mxu0  ;;  %v843_v13 = vpop.f32.mrb[4].mxu1 }
 0x17b   : > { %v576_v14 = vadd.f32 %v782_v57, %v575_v12  ;;  %v616_v15 = vadd.f32 %v843_v13, %v782_v57  ;;  %v836_v16 = vpop.f32.mrb[6].mxu0  ;;  %v607_v17 = vpop.f32.mrb[5].mxu1 }
 0x17c   : > { %628 = vst [vmem:[%s1251_s5 + $0x30] sm:$0xff] %v584_v11  ;;  %v587_v18 = vadd.f32 %v836_v16, %v782_v57  ;;  %v608_v19 = vadd.f32 %v782_v57, %v607_v17  ;;  %v578_v20 = vpop.f32.mrb[7].mxu0  ;;  %v844_v21 = vpop.f32.mrb[6].mxu1 }
 0x17d   : > { %626 = vst [vmem:[%s1251_s5 + $0x20] sm:$0xff] %v576_v14  ;;  %636 = vst [vmem:[%s1251_s5 + $0x70] sm:$0xff] %v616_v15  ;;  %v579_v22 = vadd.f32 %v782_v57, %v578_v20  ;;  %v619_v23 = vadd.f32 %v844_v21, %v782_v57  ;;  %v610_v24 = vpop.f32.mrb[7].mxu1 }
 0x17e   : > { %629 = vst [vmem:[%s1251_s5 + $0x38] sm:$0xff] %v587_v18  ;;  %634 = vst [vmem:[%s1251_s5 + $0x60] sm:$0xff] %v608_v19  ;;  %v611_v25 = vadd.f32 %v782_v57, %v610_v24 }
 0x17f   : > { %627 = vst [vmem:[%s1251_s5 + $0x28] sm:$0xff] %v579_v22  ;;  %637 = vst [vmem:[%s1251_s5 + $0x78] sm:$0xff] %v619_v23 }
 0x180   : > { %635 = vst [vmem:[%s1251_s5 + $0x68] sm:$0xff] %v611_v25 }
 0x181   : > { %973 = shalt.err (!%p970_p9)
}
 0x182   : > { %s974_s10 = scalar_lea.hbm %s1270_s12, 2048  ;;  %s978_s18 = scalar_lea.hbm %s1337_s4, 16384 }
 0x183   : > { %p975_p10 = scmp.ne.s32.totalorder %s1270_s12, %s974_s10  ;;  %p979_p13 = scmp.lt.u32.totalorder %s1270_s12, %s1337_s4 }
 0x184   : > { %p980_p0 = scmp.lt.u32.totalorder %s978_s18, %s974_s10  ;;  %p982_p2 = scmp.lt.u32.totalorder %s974_s10, %s1270_s12 }
 0x185   : > { %p976_p11 = pnand %p975_p10, %p1136_p3 }
 0x186   : > { %p981_p1 = por %p980_p0, %p979_p13 }
 0x187   : > { %p977_p12 = pneg %p976_p11 }
 0x188   : > { %p983_p4 = por %p982_p2, %p981_p1 }
 0x18a   : > { %p984_p5 = pnand %p983_p4, %p977_p12 }
 0x18c   : > { %987 = shalt.err (!%p984_p5)
}
 0x18d   : > { %s1058_s19 = smov 128   ;;  %s1059_s8 = smov 8  }
 0x18e   : > { %861 = dma.vmem_to_hbm [thread:$0]  (%p1136_p3), %s1272_s11, 2048, %s1270_s12, %s1281_s24, %s1058_s19, %s1058_s19, %s1059_s8  }
 0x18f PF: > { %p867_p6 = scmp.ge.s32.totalorder %s1054_s22, 2  ;;  %s669_s23 = sand.u32 1, %s1026_s15  }
 0x190   : > { %s670_s27 = scalar_lea.sflag [#allocation4], %s669_s23 }
 0x191   : > { %p864_p7 = pnand %p867_p6, %p1145_p8 }
 0x193   : > { %1021 = dma.done.wait (!%p864_p7), %s670_s27, 2048  }
 0x194   : > { %1023 = vsyncadd (!%p864_p7), %s670_s27, 4294965248  ;;  %s17_s22 = sadd.s32 1, %s1054_s22   ;;  %s1340_s15 = smov %s1030_s16 }
 0x195   : > { %p14_p9 = scmp.ge.s32.totalorder %s17_s22, 10   ;;  %s1341_s16 = smov %s1034_s17 }
 0x196   : > { %s1342_s17 = smov %s1154_s7  ;;  %s1343_s18 = smov %s1046_s20 }
 0x197   : > { %s1344_s19 = smov %s1050_s21  ;;  %s1345_s20 = smov %s1348_s25 }
 0x198   : > { %s1346_s21 = smov %s1352_s26  ;;  %16 = sbr.rel (!%p14_p9) target bundleno = 5 (0x5), region = 74 }
 0x19f   :  { %675 = vsyncpa [#allocation4], 1 }
 0x1a0   :  { %677 = vsyncpa [#allocation4 + $0x1], 1 }

</bundles_post_ra>
